<compile_context>
chip_gen: v6e
topology: v6e:2x2x1
jax: 0.10.0
libtpu: 0.0.40
codegen_flags: <defaults>
</compile_context>

<pallas_src>
import jax
import jax.numpy as jnp
from jax.experimental import pallas as pl
from jax.experimental.pallas import tpu as pltpu


_LANE = 128
_ROW_TILE = 32                            # multiple of every dtype's sublane packing
_VMEM_BUDGET_BYTES = 16 * 1024 * 1024     # pipeline buffers + in-kernel f32 temps
_VMEM_LIMIT_BYTES = 32 * 1024 * 1024      # explicit scoped-VMEM limit (safe v5e..v7x)
_SMALL_PROBLEM_BYTES = 1 * 1024 * 1024    # below this, the XLA fused gather wins
_MIN_SPLIT_B = 1024                       # only force >=2 grid blocks above this


def _transition_loss_kernel(idx_ref, a_ref, b_ref, g_ref, out_ref):
    """idx_ref: SMEM int32[6] = (a_stripe, b_stripe, g_stripe, a_lane, b_lane, g_lane).

    Entries 0..2 feed the index_maps (which 128-lane stripe of each input is
    DMA'd); entries 3..5 are the in-block lane offsets used for the mask-select
    here.  Inputs stay in their native dtype across HBM; the f32 cast happens
    on the tiny in-VMEM stripe.  Padded lanes of a partial final stripe (and
    padded batch rows of a partial final tile) are zeroed by the lane mask /
    dropped by the masked output write, so no extra bounds handling is needed.
    """
    ar = idx_ref[3]
    br = idx_ref[4]
    gr = idx_ref[5]

    a = a_ref[...].astype(jnp.float32)
    b = b_ref[...].astype(jnp.float32)
    g = g_ref[...].astype(jnp.float32)

    if a.shape == b.shape == g.shape:
        # One shared iota (JAX does not CSE broadcast_in_dim) and one fused
        # cross-lane reduction instead of three.
        lane = jax.lax.broadcasted_iota(jnp.int32, a.shape, 1)
        contrib = (jnp.where(lane == ar, a, 0.0)
                   + jnp.where(lane == br, b, 0.0)
                   - jnp.where(lane == gr, g, 0.0))
        s = jnp.sum(contrib, axis=1, keepdims=True)
    else:
        def pick(x, r):
            lane = jax.lax.broadcasted_iota(jnp.int32, x.shape, 1)
            return jnp.sum(jnp.where(lane == r, x, 0.0), axis=1, keepdims=True)
        s = pick(a, ar) + pick(b, br) - pick(g, gr)

    out_ref[...] = jnp.maximum(0.0, s)


def _static_normalize(idx, c):
    """Normalize/validate a Python-int index (PyTorch-style negative indexing)."""
    if isinstance(idx, int) and not isinstance(idx, bool):
        if idx < 0:
            idx += c
        if not (0 <= idx < c):
            raise IndexError(f"index {idx} is out of bounds for axis of size {c}")
    return idx


def transition_loss(log_y_alpha, log_y_beta, log_y_gamma,
                    alpha_index, beta_index, gamma_index,
                    *, block_b=None, force_pallas=False):
    """Pallas implementation of TransitionLoss.forward.  Returns f32 shape [batch]."""
    B, Ca = log_y_alpha.shape
    Bb, Cb = log_y_beta.shape
    Bg, Cg = log_y_gamma.shape
    if not (B == Bb == Bg):
        raise ValueError("batch dimensions of the three log-prob arrays must match")

    classes = (Ca, Cb, Cg)
    alpha_index = _static_normalize(alpha_index, Ca)
    beta_index = _static_normalize(beta_index, Cb)
    gamma_index = _static_normalize(gamma_index, Cg)

    idx_full = jnp.asarray([alpha_index, beta_index, gamma_index], jnp.int32)
    # Dynamic normalization of negative / traced indices.
    # TODO(synk): traced out-of-range indices are masked to 0 contribution
    # instead of raising, unlike PyTorch advanced indexing.
    idx_full = jnp.where(idx_full < 0,
                         idx_full + jnp.asarray(classes, jnp.int32), idx_full)

    inputs = (log_y_alpha, log_y_beta, log_y_gamma)
    # Each input only needs the 128-lane stripe containing its target column
    # (or the whole class dim when it is already narrower than one lane group).
    widths = tuple(min(_LANE, c) for c in classes)
    row_bytes = sum(w * x.dtype.itemsize for w, x in zip(widths, inputs))

    # Small-problem dispatch: based on the bytes the kernel would actually move.
    if not force_pallas and B * row_bytes <= _SMALL_PROBLEM_BYTES:
        s = (jnp.take(log_y_alpha, idx_full[0], axis=1).astype(jnp.float32)
             + jnp.take(log_y_beta, idx_full[1], axis=1).astype(jnp.float32)
             - jnp.take(log_y_gamma, idx_full[2], axis=1).astype(jnp.float32))
        return jnp.maximum(jnp.float32(0.0), s)

    # SMEM prefetch payload: [stripe_a, stripe_b, stripe_g, lane_a, lane_b, lane_g].
    # (For C < 128 the stripe index is always 0 and the lane offset is idx.)
    idx = jnp.concatenate([idx_full // _LANE, idx_full % _LANE])

    # ---- batch tile size ----------------------------------------------------
    # 2 pipeline buffers per input + ~4 f32-tile in-kernel temporaries per row.
    per_row_bytes = 2 * row_bytes + 4 * _LANE * 4
    max_tb = max(_ROW_TILE,
                 (_VMEM_BUDGET_BYTES // per_row_bytes) // _ROW_TILE * _ROW_TILE)
    tb = min(B, max_tb)
    if block_b is not None:
        tb = min(tb, block_b)
    # v7x megacore: keep >= 2 grid blocks when there is enough batch to shard.
    if B >= _MIN_SPLIT_B:
        half = (((B + 1) // 2 + _ROW_TILE - 1) // _ROW_TILE) * _ROW_TILE
        tb = min(tb, half)
    if tb < B:
        tb = max(_ROW_TILE, (tb // _ROW_TILE) * _ROW_TILE)   # dtype-safe rounding
    tb = min(tb, B)
    n_blocks = pl.cdiv(B, tb)

    def col_spec(width, pos):
        # index_map receives (grid_i, *prefetch_refs); the scalar-prefetched
        # stripe index makes the class-dim block data-dependent.
        return pl.BlockSpec((tb, width), lambda i, s, _p=pos: (i, s[_p]))

    out = pl.pallas_call(
        _transition_loss_kernel,
        out_shape=jax.ShapeDtypeStruct((B, 1), jnp.float32),
        grid_spec=pltpu.PrefetchScalarGridSpec(
            num_scalar_prefetch=1,           # idx -> SMEM, visible to index_maps
            grid=(n_blocks,),
            in_specs=[col_spec(widths[0], 0),
                      col_spec(widths[1], 1),
                      col_spec(widths[2], 2)],
            out_specs=pl.BlockSpec((tb, 1), lambda i, s: (i, 0)),
        ),
        compiler_params=pltpu.CompilerParams(
            dimension_semantics=("parallel",),    # no carry across batch tiles
            vmem_limit_bytes=_VMEM_LIMIT_BYTES),
    )(idx, log_y_alpha, log_y_beta, log_y_gamma)

    return out[:, 0]


if __name__ == "__main__":
    key = jax.random.PRNGKey(0)
    ks = jax.random.split(key, 16)

    def logprobs(k, b, c, dtype=jnp.float32):
        return jax.nn.log_softmax(
            jax.random.normal(k, (b, c), jnp.float32), axis=-1).astype(dtype)

    def ref_loss(a, b, g, ai, bi, gi):
        return jnp.maximum(
            0.0,
            a[:, ai].astype(jnp.float32) + b[:, bi].astype(jnp.float32)
            - g[:, gi].astype(jnp.float32))

    # Case 1: tiny, C < 128 (full-dim stripe), kernel path + JAX dispatch path.
    B1, C1 = 2, 8
    a1, b1, g1 = logprobs(ks[0], B1, C1), logprobs(ks[1], B1, C1), logprobs(ks[2], B1, C1)
    out1 = jax.block_until_ready(transition_loss(a1, b1, g1, 3, 5, 1, force_pallas=True))
    assert out1.shape == (B1,)
    assert jnp.allclose(out1, ref_loss(a1, b1, g1, 3, 5, 1), atol=1e-5, rtol=1e-5)
    out1b = jax.block_until_ready(transition_loss(a1, b1, g1, 3, 5, 1))
    assert jnp.allclose(out1b, ref_loss(a1, b1, g1, 3, 5, 1), atol=1e-5, rtol=1e-5)

    # Case 1n: negative (PyTorch-style) indices.
    out1n = jax.block_until_ready(transition_loss(a1, b1, g1, -1, 5, -8, force_pallas=True))
    assert jnp.allclose(out1n, ref_loss(a1, b1, g1, C1 - 1, 5, 0), atol=1e-5, rtol=1e-5)

    # Case 2: 128-aligned classes, bf16 inputs -> stripe fetch + in-kernel cast.
    B2, C2 = 16, 256
    a2 = logprobs(ks[3], B2, C2, jnp.bfloat16)
    b2 = logprobs(ks[4], B2, C2, jnp.bfloat16)
    g2 = logprobs(ks[5], B2, C2, jnp.bfloat16)
    ai2, bi2, gi2 = 3, 200, 131
    out2 = jax.block_until_ready(
        transition_loss(a2, b2, g2, ai2, bi2, gi2, force_pallas=True))
    assert out2.shape == (B2,)
    assert jnp.allclose(out2, ref_loss(a2, b2, g2, ai2, bi2, gi2), atol=1e-5, rtol=1e-5)

    # Case 3: multi-tile batch, non-128-aligned class count (partial last stripe,
    # index inside it), grid > 1 with the parallel batch axis.
    B3, C3 = 96, 300
    a3, b3, g3 = logprobs(ks[6], B3, C3), logprobs(ks[7], B3, C3), logprobs(ks[8], B3, C3)
    ai3, bi3, gi3 = 299, 5, 150
    out3 = jax.block_until_ready(
        transition_loss(a3, b3, g3, ai3, bi3, gi3, block_b=32, force_pallas=True))
    assert out3.shape == (B3,)
    assert jnp.allclose(out3, ref_loss(a3, b3, g3, ai3, bi3, gi3), atol=1e-5, rtol=1e-5)

    # Case 4: mismatched class counts (one narrower than a lane group) -> the
    # per-operand reduction branch of the kernel.
    B4 = 16
    a4 = logprobs(ks[9], B4, 64)
    b4 = logprobs(ks[10], B4, 256)
    g4 = logprobs(ks[11], B4, 200)
    ai4, bi4, gi4 = 63, 130, 199
    out4 = jax.block_until_ready(
        transition_loss(a4, b4, g4, ai4, bi4, gi4, force_pallas=True))
    assert out4.shape == (B4,)
    assert jnp.allclose(out4, ref_loss(a4, b4, g4, ai4, bi4, gi4), atol=1e-5, rtol=1e-5)

    print("KERNEL_OK")
</pallas_src>

<mosaic_0001>
module attributes {stable_mosaic.version = 11 : i64} {
  func.func @_transition_loss_kernel(%arg0: i32, %arg1: memref<6xi32, #tpu.memory_space<smem>>, %arg2: memref<2x8xf32, #tpu.memory_space<vmem>>, %arg3: memref<2x8xf32, #tpu.memory_space<vmem>>, %arg4: memref<2x8xf32, #tpu.memory_space<vmem>>, %arg5: memref<2x1xf32, #tpu.memory_space<vmem>>) attributes {dimension_semantics = [#tpu.dimension_semantics<parallel>], iteration_bounds = array<i64: 1>, scalar_prefetch = 1 : i64, scratch_operands = 0 : i64, tpu.core_type = #tpu.core_type<tc>, window_params = [{transform_indices = @transform_0, window_bounds = array<i64: 2, 8>}, {transform_indices = @transform_1, window_bounds = array<i64: 2, 8>}, {transform_indices = @transform_2, window_bounds = array<i64: 2, 8>}, {transform_indices = @transform_3, window_bounds = array<i64: 2, 1>}]} {
    %c3 = arith.constant 3 : index
    %0 = memref.load %arg1[%c3] : memref<6xi32, #tpu.memory_space<smem>>
    %c4 = arith.constant 4 : index
    %1 = memref.load %arg1[%c4] : memref<6xi32, #tpu.memory_space<smem>>
    %c5 = arith.constant 5 : index
    %2 = memref.load %arg1[%c5] : memref<6xi32, #tpu.memory_space<smem>>
    %c0 = arith.constant 0 : index
    %c0_0 = arith.constant 0 : index
    %3 = vector.load %arg2[%c0, %c0_0] : memref<2x8xf32, #tpu.memory_space<vmem>>, vector<2x8xf32>
    %c0_1 = arith.constant 0 : index
    %c0_2 = arith.constant 0 : index
    %4 = vector.load %arg3[%c0_1, %c0_2] : memref<2x8xf32, #tpu.memory_space<vmem>>, vector<2x8xf32>
    %c0_3 = arith.constant 0 : index
    %c0_4 = arith.constant 0 : index
    %5 = vector.load %arg4[%c0_3, %c0_4] : memref<2x8xf32, #tpu.memory_space<vmem>>, vector<2x8xf32>
    %6 = tpu.iota {dimensions = array<i32: 1>} : vector<2x8xi32>
    %7 = vector.broadcast %0 : i32 to vector<2x8xi32>
    %8 = arith.cmpi eq, %6, %7 : vector<2x8xi32>
    %cst = arith.constant 0.000000e+00 : f32
    %9 = vector.broadcast %cst : f32 to vector<2x8xf32>
    %10 = arith.select %8, %3, %9 : vector<2x8xi1>, vector<2x8xf32>
    %11 = vector.broadcast %1 : i32 to vector<2x8xi32>
    %12 = arith.cmpi eq, %6, %11 : vector<2x8xi32>
    %cst_5 = arith.constant 0.000000e+00 : f32
    %13 = vector.broadcast %cst_5 : f32 to vector<2x8xf32>
    %14 = arith.select %12, %4, %13 : vector<2x8xi1>, vector<2x8xf32>
    %15 = arith.addf %10, %14 : vector<2x8xf32>
    %16 = vector.broadcast %2 : i32 to vector<2x8xi32>
    %17 = arith.cmpi eq, %6, %16 : vector<2x8xi32>
    %cst_6 = arith.constant 0.000000e+00 : f32
    %18 = vector.broadcast %cst_6 : f32 to vector<2x8xf32>
    %19 = arith.select %17, %5, %18 : vector<2x8xi1>, vector<2x8xf32>
    %20 = arith.subf %15, %19 : vector<2x8xf32>
    %cst_7 = arith.constant dense<0.000000e+00> : vector<2xf32>
    %21 = vector.multi_reduction <add>, %20, %cst_7 [1] : vector<2x8xf32> to vector<2xf32>
    %22 = vector.shape_cast %21 : vector<2xf32> to vector<2x1xf32>
    %cst_8 = arith.constant 0.000000e+00 : f32
    %23 = vector.broadcast %cst_8 : f32 to vector<2x1xf32>
    %24 = arith.maximumf %23, %22 : vector<2x1xf32>
    %c0_9 = arith.constant 0 : index
    %c0_10 = arith.constant 0 : index
    %25 = vector.load %arg5[%c0_9, %c0_10] : memref<2x1xf32, #tpu.memory_space<vmem>>, vector<2x1xf32>
    tpu.vector_store %arg5[%c0_9, %c0_10], %24 {strides = array<i32>} : memref<2x1xf32, #tpu.memory_space<vmem>>, vector<2x1xf32>,
    return
  }
  func.func @transform_0(%arg0: i32, %arg1: memref<6xi32, #tpu.memory_space<smem>>) -> (i32, i32) {
    %c0 = arith.constant 0 : index
    %0 = memref.load %arg1[%c0] : memref<6xi32, #tpu.memory_space<smem>>
    %c0_i32 = arith.constant 0 : i32
    return %arg0, %0 : i32, i32
  }
  func.func @transform_1(%arg0: i32, %arg1: memref<6xi32, #tpu.memory_space<smem>>) -> (i32, i32) {
    %c1 = arith.constant 1 : index
    %0 = memref.load %arg1[%c1] : memref<6xi32, #tpu.memory_space<smem>>
    %c0_i32 = arith.constant 0 : i32
    return %arg0, %0 : i32, i32
  }
  func.func @transform_2(%arg0: i32, %arg1: memref<6xi32, #tpu.memory_space<smem>>) -> (i32, i32) {
    %c2 = arith.constant 2 : index
    %0 = memref.load %arg1[%c2] : memref<6xi32, #tpu.memory_space<smem>>
    %c0_i32 = arith.constant 0 : i32
    return %arg0, %0 : i32, i32
  }
  func.func @transform_3(%arg0: i32, %arg1: memref<6xi32, #tpu.memory_space<smem>>) -> (i32, i32) {
    %c0_i32 = arith.constant 0 : i32
    %c0_i32_0 = arith.constant 0 : i32
    return %arg0, %c0_i32 : i32, i32
  }
}

</mosaic_0001>

<bundles_post_ra>
// kernel: tpu_custom_call.1
= control target key start
LH: loop header
LB: loop body
LE: loop exit
PB: predicated region body
PF: predicated region fallthrough
CT: control target
= control target key end

     0   :  { %s158_s15 = smov [#allocation3]   ;;  %s206_s0 = inlined_call_operand.hbm [shape: s32[6], index: 0, kind: input, shape index: {}]   ;;  %s207_s1 = inlined_call_operand.hbm [shape: f32[2,8], index: 1, kind: input, shape index: {}]   ;;  %s208_s2 = inlined_call_operand.vmem [shape: f32[2,8], index: 2, kind: input, shape index: {}]   ;;  %s209_s3 = inlined_call_operand.vmem [shape: f32[2,8], index: 3, kind: input, shape index: {}]   ;;  %s210_s4 = inlined_call_operand.vmem [shape: f32[2,1], index: 4, kind: output, shape index: {}]  }
   0x1   :  { %10 = dma.hbm_to_smem %s206_s0, 16, %s158_s15, [#allocation2] }
   0x2   :  { %154 = dma.done.wait [#allocation2], 16 }
   0x3   :  { %155 = vsyncadd [#allocation2], 4294967280 }
   0x4   :  { %12 = sfence }
   0x5   :  { %13 = vsyncpa [#allocation5], 0  ;;  %s16_s18 = sld [smem:[#allocation3]]  ;;  %s159_s19 = smov [#allocation4]  }
   0x6   :  { %s23_s20 = sshll.u32 %s159_s19, 4  ;;  %s134_s28 = scalar_lea.hbm %s207_s1, 32  ;;  %s24_s20 = int_to_ptr.vmem [resolvable:$true] %s23_s20 }
   0xb   :  { %s114_s21 = sshll.u32 %s16_s18, 5 }
   0xc   :  { %s21_s24 = scalar_lea.hbm %s207_s1, %s114_s21 }
   0xd   :  { %s132_s25 = scalar_lea.hbm %s21_s24, 32  ;;  %p135_p1 = scmp.lt.s32.totalorder %s21_s24, %s207_s1 }
   0xe   :  { %p133_p0 = scmp.ne.s32.totalorder %s21_s24, %s132_s25  ;;  %p136_p2 = scmp.lt.s32.totalorder %s134_s28, %s132_s25 }
  0x10   :  { %p137_p3 = por %p136_p2, %p135_p1 }
  0x12   :  { %p138_p4 = pnand %p137_p3, %p133_p0 }
  0x14   :  { %141 = shalt.err (!%p138_p4)
}
  0x15   :  { %s142_s30 = scalar_lea.vmem %s24_s20, 32  ;;  %p147_p6 = scmp.lt.s32.totalorder %s24_s20, %s24_s20 }
  0x16   :  { %p143_p5 = scmp.ne.s32.totalorder %s24_s20, %s142_s30  ;;  %p148_p7 = scmp.lt.s32.totalorder %s142_s30, %s142_s30 }
  0x18   :  { %p149_p8 = por %p148_p7, %p147_p6 }
  0x1a   :  { %p150_p9 = pnand %p149_p8, %p143_p5 }
  0x1c   :  { %153 = shalt.err (!%p150_p9)
}
  0x1d   :  { %26 = dma.hbm_to_vmem [thread:$0]  %s21_s24, 32, %s24_s20, [#allocation5]  }
  0x1e   :  { %156 = dma.done.wait [#allocation5], 32  }
  0x1f   :  { %157 = vsyncadd [#allocation5], 4294967264  ;;  %s115_s5 = sld [smem:[#allocation3 + $0x1]]  ;;  %v75_v0 = vlaneseq  ;;  %v72_v2 = vld [vmem:[#allocation4] sm:$0x3]  ;;  %vm88_vm3 = vcmask 58368  }
  0x20   :  { %s117_s6 = sld [smem:[#allocation3 + $0x2]]  ;;  %vm93_vm4 = vcmask 1024  }
  0x21   :  { %s119_s7 = sld [smem:[#allocation3 + $0x3]]  ;;  %v76_v1 = vand.u32 127, %v75_v0 }
  0x22   :  { %s120_s8 = sld [smem:[#allocation3 + $0x4]] }
  0x23   :  { %s121_s1 = sld [smem:[#allocation3 + $0x5]] }
  0x25   :  { %p58_p10 = scmp.lt.s32.totalorder %s115_s5, 0 }
  0x26   :  { %p64_p11 = scmp.lt.s32.totalorder %s117_s6, 0 }
  0x27   :  { %s212_s5 = smov (!%p58_p10, %s115_s5), 0  ;;  %v77_v3 = vstv %s119_s7 }
  0x28   :  { %s214_s6 = smov (!%p64_p11, %s117_s6), 0  ;;  %vm78_vm0 = vcmp.eq.s32.totalorder %v76_v1, %v77_v3  ;;  %v80_v4 = vstv %s120_s8  ;;  %s116_s9 = sshll.u32 %s212_s5, 1 }
  0x29   :  { %vm81_vm1 = vcmp.eq.s32.totalorder %v76_v1, %v80_v4  ;;  %v84_v5 = vstv %s121_s1  ;;  %s61_s12 = scalar_lea.vmem %s208_s2, %s116_s9  ;;  %s118_s13 = sshll.u32 %s214_s6, 1  ;;  %v79_v6 = vsel %vm78_vm0, %v72_v2, 0.0 }
  0x2a   :  { %vm85_vm2 = vcmp.eq.s32.totalorder %v76_v1, %v84_v5  ;;  %s67_s16 = scalar_lea.vmem %s209_s3, %s118_s13  ;;  %v73_v7 = vld [vmem:[%s61_s12] sm:$0x3] }
  0x2b   :  { %v74_v8 = vld [vmem:[%s67_s16] sm:$0x3]  ;;  %v82_v9 = vsel %vm81_vm1, %v73_v7, 0.0 }
  0x2c   :  { %v83_v10 = vadd.f32 %v82_v9, %v79_v6  ;;  %v86_v11 = vsel %vm85_vm2, %v74_v8, 0.0 }
  0x2e   :  { %v87_v12 = vsub.f32 %v83_v10, %v86_v11 }
  0x30   :  { %v89_v13 = vsel %vm88_vm3, %v87_v12, 0.0 }
  0x31   :  { %90 = vadd.xlane.f32.xlu0 %v89_v13 }
  0xba   :  { %v91_v14 = vpop.xlane.xlu0 %90 }
  0xbb   :  { %v92_v15 = vmax.f32 %v91_v14, 0.0 }
  0xbd   :  { %94 = vst.msk [vmem:[%s210_s4] sm:$0x3] %vm93_vm4, %v92_v15 }
  0xbe   :  { %99 = vsyncpa [#allocation5], 1 }

</bundles_post_ra>
